<compile_context>
chip_gen: v6e
topology: v6e:2x2x1
jax: 0.10.0
libtpu: 0.0.40
codegen_flags: <defaults>
</compile_context>

<pallas_src>
from typing import Dict, List, Tuple

import jax
import jax.numpy as jnp
from jax.experimental import pallas as pl
from jax.experimental.pallas import tpu as pltpu


# ----------------------------- helpers ------------------------------------- #

def _round_up(x: int, m: int) -> int:
    return (x + m - 1) // m * m


# ----------------------------- Pallas kernel ------------------------------- #

def _film_linear_kernel(x_ref, w_ref, b_ref, o_ref):
    # x_ref: (B_pad, C) bf16, w_ref: (C, TILE_F) bf16,
    # b_ref: (1, TILE_F) f32,  o_ref: (B_pad, TILE_F) f32
    o_ref[...] = (
        jnp.dot(x_ref[...], w_ref[...], preferred_element_type=jnp.float32)
        + b_ref[...]
    )


def film_fused_linear(conditions: jax.Array,
                      w_cat: jax.Array,
                      b_cat: jax.Array,
                      *,
                      tile_f: int = 512) -> jax.Array:
    """Y = conditions @ w_cat + b_cat via an F-tiled, bf16-fed Pallas matmul.

    Returns the (B, F) float32 result (padding stripped).
    """
    B, C = conditions.shape
    C2, F = w_cat.shape
    assert C == C2

    # Lane/sublane-dense padding: B -> multiple of 8, F -> multiple of TILE_F
    # (TILE_F itself a multiple of 128, capped at `tile_f`).
    B_pad = max(_round_up(B, 8), 8)
    tile_f = min(tile_f, _round_up(F, 128))
    F_pad = _round_up(F, tile_f)
    n_tiles = F_pad // tile_f

    x = conditions
    if B_pad != B:
        x = jnp.pad(x, ((0, B_pad - B), (0, 0)))
    w = w_cat
    b2d = b_cat.reshape(1, F)
    if F_pad != F:
        w = jnp.pad(w, ((0, 0), (0, F_pad - F)))
        b2d = jnp.pad(b2d, ((0, 0), (0, F_pad - F)))

    # bf16 operands: halves the (bottleneck) weight HBM stream, native MXU path.
    # Accumulation and bias add remain f32.
    x_bf = x.astype(jnp.bfloat16)
    w_bf = w.astype(jnp.bfloat16)

    y = pl.pallas_call(
        _film_linear_kernel,
        out_shape=jax.ShapeDtypeStruct((B_pad, F_pad), jnp.float32),
        grid_spec=pltpu.PrefetchScalarGridSpec(
            num_scalar_prefetch=0,
            grid=(n_tiles,),
            in_specs=[
                pl.BlockSpec((B_pad, C), lambda j: (0, 0)),     # conditions (resident)
                pl.BlockSpec((C, tile_f), lambda j: (0, j)),    # weight tile (streamed)
                pl.BlockSpec((1, tile_f), lambda j: (0, j)),    # bias tile (tiny)
            ],
            out_specs=pl.BlockSpec((B_pad, tile_f), lambda j: (0, j)),
        ),
        compiler_params=pltpu.CompilerParams(
            # F tiles are independent -> shard across v7x's two TensorCores.
            dimension_semantics=("parallel",),
        ),
    )(x_bf, w_bf, b2d)

    return y[:B, :F]


# --------------------------- FiLM module (JAX) ------------------------------ #

def _flatten_film_meta(film_meta: Dict,
                       prefix: Tuple[str, ...] = ()) -> List[Tuple[Tuple[str, ...], int]]:
    """Flatten nested film_meta dict to a list of (path, num_features) leaves."""
    leaves = []
    for name, value in film_meta.items():
        if isinstance(value, dict):
            leaves.extend(_flatten_film_meta(value, prefix + (name,)))
        elif isinstance(value, int):
            leaves.append((prefix + (name,), value))
    return leaves


class FiLMPallas:
    """JAX/Pallas re-implementation of the PyTorch FiLM module."""

    def __init__(self, film_meta: Dict, condition_size: int, key: jax.Array):
        self.condition_size = condition_size
        self.leaves = _flatten_film_meta(film_meta)  # [(path, num_features), ...]

        # Deterministic parameter init (mirrors nn.Linear shapes; init_layer in the
        # original zeroes the bias and xavier-inits the weight).
        weights = []
        biases = []
        for i, (path, num_features) in enumerate(self.leaves):
            k = jax.random.fold_in(key, i)
            fan_in, fan_out = condition_size, num_features
            scale = jnp.sqrt(6.0 / (fan_in + fan_out))  # xavier-uniform
            w = jax.random.uniform(
                k, (num_features, condition_size), jnp.float32, -scale, scale
            )
            b = jnp.zeros((num_features,), jnp.float32)
            weights.append(w)
            biases.append(b)

        # Concatenate along output-feature axis; store as (C, F_total) for matmul.
        self.w_cat = jnp.concatenate(weights, axis=0).T  # (C, F_total)
        self.b_cat = jnp.concatenate(biases, axis=0)     # (F_total,)

        leaves = self.leaves

        def _forward(conditions, w_cat, b_cat):
            y = film_fused_linear(conditions, w_cat, b_cat)  # (B, F_total) f32
            # Split fused output into per-leaf (B, nf, 1, 1) tensors; under jit
            # XLA fuses these slices/reshapes into the kernel's epilogue.
            film_dict: Dict = {}
            offset = 0
            for (path, num_features) in leaves:
                leaf = y[:, offset:offset + num_features][:, :, None, None]
                offset += num_features
                d = film_dict
                for name in path[:-1]:
                    d = d.setdefault(name, {})
                d[path[-1]] = leaf
            return film_dict

        self._forward = jax.jit(_forward)

    def __call__(self, conditions: jax.Array) -> Dict:
        """conditions: (B, condition_size) -> nested dict of (B, F, 1, 1) arrays."""
        return self._forward(conditions, self.w_cat, self.b_cat)


# --------------------------------- demo ------------------------------------ #

if __name__ == "__main__":
    # Small film_meta consistent with the module's docstring.
    film_meta = {
        "encoder_block1": {"conv_block1": {"beta1": 8, "beta2": 8}},
        "decoder_block1": {"conv_block1": {"beta1": 16}},
    }
    condition_size = 32
    batch_size = 2

    key = jax.random.PRNGKey(0)
    k_params, k_cond = jax.random.split(key)

    film = FiLMPallas(film_meta, condition_size, k_params)
    conditions = jax.random.normal(k_cond, (batch_size, condition_size), jnp.float32)

    film_dict = film(conditions)
    film_dict = jax.block_until_ready(film_dict)

    # Pure-JAX reference using the same bf16-input / f32-accumulate recipe.
    y_ref = (
        jnp.dot(
            conditions.astype(jnp.bfloat16),
            film.w_cat.astype(jnp.bfloat16),
            preferred_element_type=jnp.float32,
        )
        + film.b_cat
    )
    # Also a pure-f32 reference to bound the bf16 error.
    y_ref_f32 = conditions @ film.w_cat + film.b_cat

    offset = 0
    ok = True
    for (path, nf) in film.leaves:
        d = film_dict
        for name in path:
            d = d[name]
        expected = y_ref[:, offset:offset + nf][:, :, None, None]
        expected_f32 = y_ref_f32[:, offset:offset + nf][:, :, None, None]
        offset += nf
        ok &= d.shape == (batch_size, nf, 1, 1)
        ok &= bool(jnp.allclose(d, expected, atol=1e-3, rtol=1e-3))
        ok &= bool(jnp.allclose(d, expected_f32, atol=5e-2, rtol=5e-2))
    assert ok, "FiLM Pallas kernel mismatch vs reference"

    print("KERNEL_OK")
</pallas_src>

<mosaic_0001>
module attributes {stable_mosaic.version = 11 : i64} {
  func.func @_film_linear_kernel(%arg0: i32, %arg1: memref<8x32xbf16, #tpu.memory_space<vmem>>, %arg2: memref<32x128xbf16, #tpu.memory_space<vmem>>, %arg3: memref<1x128xf32, #tpu.memory_space<vmem>>, %arg4: memref<8x128xf32, #tpu.memory_space<vmem>>) attributes {dimension_semantics = [#tpu.dimension_semantics<parallel>], iteration_bounds = array<i64: 1>, scalar_prefetch = 0 : i64, scratch_operands = 0 : i64, tpu.core_type = #tpu.core_type<tc>, window_params = [{pipeline_mode = #tpu.pipeline_mode<synchronous>, transform_indices = @transform_0, window_bounds = array<i64: 8, 32>}, {transform_indices = @transform_1, window_bounds = array<i64: 32, 128>}, {transform_indices = @transform_2, window_bounds = array<i64: 1, 128>}, {transform_indices = @transform_3, window_bounds = array<i64: 8, 128>}]} {
    %c0 = arith.constant 0 : index
    %c0_0 = arith.constant 0 : index
    %0 = vector.load %arg1[%c0, %c0_0] : memref<8x32xbf16, #tpu.memory_space<vmem>>, vector<8x32xbf16>
    %c0_1 = arith.constant 0 : index
    %c0_2 = arith.constant 0 : index
    %1 = vector.load %arg2[%c0_1, %c0_2] : memref<32x128xbf16, #tpu.memory_space<vmem>>, vector<32x128xbf16>
    %cst = arith.constant dense<0.000000e+00> : vector<8x128xf32>
    %2 = tpu.matmul %0, %1, %cst {dimension_numbers = #tpu.dot_dimension_numbers<[1], [0], [0], [1], [0, 0, 1, 1], [], []>} : vector<8x32xbf16>, vector<32x128xbf16>, vector<8x128xf32> -> vector<8x128xf32>
    %c0_3 = arith.constant 0 : index
    %c0_4 = arith.constant 0 : index
    %3 = vector.load %arg3[%c0_3, %c0_4] : memref<1x128xf32, #tpu.memory_space<vmem>>, vector<1x128xf32>
    %4 = vector.broadcast %3 : vector<1x128xf32> to vector<8x128xf32>
    %5 = arith.addf %2, %4 : vector<8x128xf32>
    %c0_5 = arith.constant 0 : index
    %c0_6 = arith.constant 0 : index
    %6 = vector.load %arg4[%c0_5, %c0_6] : memref<8x128xf32, #tpu.memory_space<vmem>>, vector<8x128xf32>
    tpu.vector_store %arg4[%c0_5, %c0_6], %5 {strides = array<i32>} : memref<8x128xf32, #tpu.memory_space<vmem>>, vector<8x128xf32>,
    return
  }
  func.func @transform_0(%arg0: i32) -> (i32, i32) {
    %c0_i32 = arith.constant 0 : i32
    %c0_i32_0 = arith.constant 0 : i32
    %c0_i32_1 = arith.constant 0 : i32
    return %c0_i32, %c0_i32_0 : i32, i32
  }
  func.func @transform_1(%arg0: i32) -> (i32, i32) {
    %c0_i32 = arith.constant 0 : i32
    %c0_i32_0 = arith.constant 0 : i32
    return %c0_i32, %arg0 : i32, i32
  }
  func.func @transform_2(%arg0: i32) -> (i32, i32) {
    %c0_i32 = arith.constant 0 : i32
    %c0_i32_0 = arith.constant 0 : i32
    return %c0_i32, %arg0 : i32, i32
  }
  func.func @transform_3(%arg0: i32) -> (i32, i32) {
    %c0_i32 = arith.constant 0 : i32
    %c0_i32_0 = arith.constant 0 : i32
    return %c0_i32, %arg0 : i32, i32
  }
}

</mosaic_0001>

<bundles_post_ra>
// kernel: _forward.1
= control target key start
LH: loop header
LB: loop body
LE: loop exit
PB: predicated region body
PF: predicated region fallthrough
CT: control target
= control target key end

     0   :  { %v107_v0 = vmov 0.0   ;;  %vm108_vm0 = vmmov 0   ;;  %vm39_vm1 = vcmask 261120   ;;  %s144_s1 = inlined_call_operand.vmem [shape: bf16[32,128], index: 1, kind: input, shape index: {}]   ;;  %s145_s0 = inlined_call_operand.vmem [shape: bf16[8,32], index: 0, kind: input, shape index: {}]   ;;  %s146_s2 = inlined_call_operand.vmem [shape: f32[1,128], index: 2, kind: input, shape index: {}]   ;;  %s147_s3 = inlined_call_operand.vmem [shape: f32[8,128], index: 3, kind: output, shape index: {}]  }
   0x1   :  { %95 = vmatprep.subr.bf16.mxu0 %v107_v0  ;;  %v105_v1 = vld [vmem:[%s144_s1 + $0x8] sm:$0xff]   ;;  %99 = vmatprep.mubr.msk.bf16.mxu0 %vm108_vm0, %v107_v0  ;;  %v106_v2 = vld [vmem:[%s144_s1] sm:$0xff]  }
   0x2   :  { %96 = vmatpush3.bf16.msra.mxu0 %v105_v1  ;;  %v15_v3 = vld [vmem:[%s145_s0] sm:$0xf] }
   0x3   :  { %97 = vmatprep.subr.bf16.mxu0 %v107_v0  ;;  %v88_v4 = vld [vmem:[%s146_s2] ss:$0 sm:$0xff] }
   0x6   :  { %98 = vmatpush3.bf16.msra.mxu0 %v106_v2 }
   0x9   :  { %100 = vmatmul.mubr.msk.bf16.vlgmr.msra.gmra.mxu0 %vm39_vm1, %v15_v3 }
  0xc9   :  { %v77_v5 = vpop.f32.mrf.mxu0 }
  0xca   :  { %v78_v6 = vadd.f32 %v88_v4, %v77_v5 }
  0xcb   :  { %v101_v7 = vpop.f32.mrf.mxu0 }
  0xcc   :  { %83 = vst [vmem:[%s147_s3] sm:$0xff] %v78_v6 }
  0xcd   :  { %v80_v8 = vpop.f32.mrf.mxu0 }
  0xcf   :  { %v102_v9 = vpop.f32.mrf.mxu0 }

</bundles_post_ra>
